<compile_context>
chip_gen: v6e
topology: v6e:2x2x1
jax: 0.10.0
libtpu: 0.0.40
codegen_flags: <defaults>
</compile_context>

<pallas_src>
import functools

import numpy as np
import jax
import jax.numpy as jnp
from jax.experimental import pallas as pl
from jax.experimental.pallas import tpu as pltpu

_LANES = 128


def _hswish(x):
    # PyTorch nn.Hardswish: x * relu6(x + 3) / 6
    return x * jnp.clip(x + 3.0, 0.0, 6.0) * (1.0 / 6.0)


def _round_up(n, m):
    return ((n + m - 1) // m) * m


# ---------------------------------------------------------------------------
# Fused MBConv kernels (padded-flat, pixels-on-lanes layout)
# ---------------------------------------------------------------------------
def _mbconv_s1_kernel(x_ref, wexp_ref, s1_ref, b1_ref, wdw_ref, s2_ref, b2_ref,
                      wpw_ref, s3_ref, b3_ref, m_ref, o_ref, *, wp, residual):
    """Stride-1 MBConv.  x_ref: (1, Cin, Mp) padded-flat (row stride wp);
    o_ref: (1, Cout, Mp) padded-flat.  m_ref: (1, Mp) interior mask."""
    x = x_ref[0]                                   # (Cin, Mp)
    mp = x.shape[1]
    m = m_ref[...]                                 # (1, Mp)

    # 1x1 expand + BN + hswish ; lane-dense MXU output (Cmid, Mp)
    h = jnp.dot(wexp_ref[...], x, preferred_element_type=jnp.float32)
    h = _hswish(h * s1_ref[...] + b1_ref[...]) * m  # re-zero the padded border

    # 3x3 depthwise (stride 1): 9 lane-rolled taps, per-channel scalar weights
    wdw = wdw_ref[...]                             # (Cmid, 9)
    z = None
    for di in range(3):
        for dj in range(3):
            s = (di - 1) * wp + (dj - 1)           # tap[q] = h[q + s]
            tap = h if s == 0 else pltpu.roll(h, (-s) % mp, 1)
            t = wdw[:, di * 3 + dj:di * 3 + dj + 1] * tap
            z = t if z is None else z + t
    d = _hswish(z * s2_ref[...] + b2_ref[...])

    # 1x1 project + BN (+ identity residual), lane-dense store
    out = jnp.dot(wpw_ref[...], d, preferred_element_type=jnp.float32)
    out = out * s3_ref[...] + b3_ref[...]
    if residual:
        out = out + x.astype(jnp.float32)
    o_ref[0] = (out * m).astype(o_ref.dtype)


def _mbconv_s2_kernel(xq_ref, wexp_ref, s1_ref, b1_ref, wdw_ref, s2_ref, b2_ref,
                      wpw_ref, s3_ref, b3_ref, mq_ref, mo_ref, o_ref, *, wpo):
    """Stride-2 MBConv.  xq_ref: (1, Cin, 4*Mplane) = the 4 spatial parity
    planes of the zero-padded input laid out on the OUTPUT padded-flat grid
    ((Ho+2) x (Wo+2), row stride wpo) and concatenated along lanes.
    mq_ref: (1, 4*Mplane) valid-pixel mask;  mo_ref: (1, Mplane) output mask."""
    xq = xq_ref[0]                                  # (Cin, 4*Mplane)
    mplane = xq.shape[1] // 4

    # 1x1 expand on all 4 parity planes in one lane-dense matmul
    h = jnp.dot(wexp_ref[...], xq, preferred_element_type=jnp.float32)
    h = _hswish(h * s1_ref[...] + b1_ref[...]) * mq_ref[...]
    hp = [h[:, p * mplane:(p + 1) * mplane] for p in range(4)]   # aligned slices

    # 3x3 depthwise, stride 2: tap (di,dj) reads parity plane (di%2, dj%2)
    # shifted by (di//2)*wpo + (dj//2) in output padded-flat coordinates.
    wdw = wdw_ref[...]
    z = None
    for di in range(3):
        for dj in range(3):
            p = (di % 2) * 2 + (dj % 2)
            s = (di // 2) * wpo + (dj // 2)
            tap = hp[p] if s == 0 else pltpu.roll(hp[p], (-s) % mplane, 1)
            t = wdw[:, di * 3 + dj:di * 3 + dj + 1] * tap
            z = t if z is None else z + t
    d = _hswish(z * s2_ref[...] + b2_ref[...])

    out = jnp.dot(wpw_ref[...], d, preferred_element_type=jnp.float32)
    out = out * s3_ref[...] + b3_ref[...]
    o_ref[0] = (out * mo_ref[...]).astype(o_ref.dtype)


# ---------------------------------------------------------------------------
# pallas_call wrappers
# ---------------------------------------------------------------------------
def _cost_estimate(n, cin, cmid, cout, m_exp, m_rest):
    flops = 2 * n * (cin * cmid * m_exp + 9 * cmid * m_rest + cmid * cout * m_rest)
    bytes_accessed = 4 * (n * cin * m_exp + n * cout * m_rest + cin * cmid
                          + 9 * cmid + cmid * cout + 4 * cmid + 2 * cout
                          + m_exp + m_rest)
    return pl.CostEstimate(flops=flops, transcendentals=0,
                           bytes_accessed=bytes_accessed)


def _mbconv_stride1_call(x, prep, mask, *, wp, residual):
    n, cin, mp = x.shape
    wexpT, s1, b1, wdw9, s2, b2, wpwT, s3, b3 = prep
    cmid, cout = wexpT.shape[0], wpwT.shape[0]
    if residual:
        assert cin == cout, "identity residual requires Cin == Cout"

    kern = functools.partial(_mbconv_s1_kernel, wp=wp, residual=residual)
    full2 = lambda i: (0, 0)
    return pl.pallas_call(
        kern,
        out_shape=jax.ShapeDtypeStruct((n, cout, mp), x.dtype),
        grid_spec=pltpu.PrefetchScalarGridSpec(
            num_scalar_prefetch=0,
            grid=(n,),
            in_specs=[
                pl.BlockSpec((1, cin, mp), lambda i: (i, 0, 0)),
                pl.BlockSpec((cmid, cin), full2),
                pl.BlockSpec((cmid, 1), full2),
                pl.BlockSpec((cmid, 1), full2),
                pl.BlockSpec((cmid, 9), full2),
                pl.BlockSpec((cmid, 1), full2),
                pl.BlockSpec((cmid, 1), full2),
                pl.BlockSpec((cout, cmid), full2),
                pl.BlockSpec((cout, 1), full2),
                pl.BlockSpec((cout, 1), full2),
                pl.BlockSpec((1, mp), full2),
            ],
            out_specs=pl.BlockSpec((1, cout, mp), lambda i: (i, 0, 0)),
        ),
        compiler_params=pltpu.CompilerParams(dimension_semantics=("parallel",)),
        cost_estimate=_cost_estimate(n, cin, cmid, cout, mp, mp),
    )(x, wexpT, s1, b1, wdw9, s2, b2, wpwT, s3, b3, mask)


def _mbconv_stride2_call(planes, prep, mask_planes, mask_out, *, wpo):
    n, cin, m4 = planes.shape
    mplane = m4 // 4
    wexpT, s1, b1, wdw9, s2, b2, wpwT, s3, b3 = prep
    cmid, cout = wexpT.shape[0], wpwT.shape[0]

    kern = functools.partial(_mbconv_s2_kernel, wpo=wpo)
    full2 = lambda i: (0, 0)
    return pl.pallas_call(
        kern,
        out_shape=jax.ShapeDtypeStruct((n, cout, mplane), planes.dtype),
        grid_spec=pltpu.PrefetchScalarGridSpec(
            num_scalar_prefetch=0,
            grid=(n,),
            in_specs=[
                pl.BlockSpec((1, cin, m4), lambda i: (i, 0, 0)),
                pl.BlockSpec((cmid, cin), full2),
                pl.BlockSpec((cmid, 1), full2),
                pl.BlockSpec((cmid, 1), full2),
                pl.BlockSpec((cmid, 9), full2),
                pl.BlockSpec((cmid, 1), full2),
                pl.BlockSpec((cmid, 1), full2),
                pl.BlockSpec((cout, cmid), full2),
                pl.BlockSpec((cout, 1), full2),
                pl.BlockSpec((cout, 1), full2),
                pl.BlockSpec((1, m4), full2),
                pl.BlockSpec((1, mplane), full2),
            ],
            out_specs=pl.BlockSpec((1, cout, mplane), lambda i: (i, 0, 0)),
        ),
        compiler_params=pltpu.CompilerParams(dimension_semantics=("parallel",)),
        cost_estimate=_cost_estimate(n, cin, cmid, cout, m4, mplane),
    )(planes, wexpT, s1, b1, wdw9, s2, b2, wpwT, s3, b3, mask_planes, mask_out)


# ---------------------------------------------------------------------------
# Wrapper-side layout helpers (operate only on the SMALL stage input / output)
# ---------------------------------------------------------------------------
def _interior_mask(h, w, mp_pad):
    """(1, mp_pad) f32 mask: 1 at interior pixels of the padded (h+2, w+2) grid."""
    m = np.zeros((h + 2, w + 2), np.float32)
    m[1:h + 1, 1:w + 1] = 1.0
    m = np.pad(m.reshape(1, -1), ((0, 0), (0, mp_pad - (h + 2) * (w + 2))))
    return jnp.asarray(m)


def _stride2_planes(xp, ho, wo, mplane):
    """xp: (N, C, H+2, W+2) spatially zero-padded.  Returns (N, C, 4*mplane):
    the four parity planes Q[pr,pc][r,c] = xp[2r-2+pr, 2c-2+pc] laid out on the
    padded-flat grid of the stride-2 OUTPUT ((Ho+2) x (Wo+2)), concatenated."""
    n, c, _, _ = xp.shape
    hpo, wpo = ho + 2, wo + 2
    planes = []
    for pr in range(2):
        for pc in range(2):
            sub = xp[:, :, pr:pr + 2 * ho + 1:2, pc:pc + 2 * wo + 1:2]  # (N,C,Ho+1,Wo+1)
            q = jnp.pad(sub, ((0, 0), (0, 0), (1, 0), (1, 0)))          # (N,C,Ho+2,Wo+2)
            q = q.reshape(n, c, hpo * wpo)
            q = jnp.pad(q, ((0, 0), (0, 0), (0, mplane - hpo * wpo)))
            planes.append(q)
    return jnp.concatenate(planes, axis=-1)


def _prep_params(params):
    """Fold params into the kernel layouts (channels on sublanes)."""
    w_exp, s1, b1, w_dw, s2, b2, w_pw, s3, b3 = params
    cmid, cout = w_exp.shape[1], w_pw.shape[1]
    f32 = jnp.float32
    return (
        jnp.asarray(w_exp.T, f32),                                   # (Cmid, Cin)
        s1.reshape(cmid, 1).astype(f32), b1.reshape(cmid, 1).astype(f32),
        jnp.transpose(w_dw, (2, 0, 1)).reshape(cmid, 9).astype(f32),  # [c, di*3+dj]
        s2.reshape(cmid, 1).astype(f32), b2.reshape(cmid, 1).astype(f32),
        jnp.asarray(w_pw.T, f32),                                    # (Cout, Cmid)
        s3.reshape(cout, 1).astype(f32), b3.reshape(cout, 1).astype(f32),
    )


def mbconv_stage(x_nchw, params_list):
    """Fused Pallas forward of MBConv_stage (eval).  x_nchw: (N, Cin, H, W).
    Returns (N, Cout, H//2, W//2) in NCHW (first block has stride 2)."""
    n, _, h, w = x_nchw.shape
    assert h % 2 == 0 and w % 2 == 0, "stride-2 parity split assumes even H, W"
    ho, wo = h // 2, w // 2
    hpo, wpo = ho + 2, wo + 2
    mplane = _round_up(hpo * wpo, _LANES)

    preps = [_prep_params(p) for p in params_list]

    # One spatial zero-pad of the (small) stage input; after this everything
    # stays in the padded-flat layout and is produced/consumed only by kernels.
    xp = jnp.pad(x_nchw, ((0, 0), (0, 0), (1, 1), (1, 1)))
    planes = _stride2_planes(xp, ho, wo, mplane)

    ind = np.zeros((1, 1, h + 2, w + 2), np.float32)
    ind[:, :, 1:h + 1, 1:w + 1] = 1.0
    mask_planes = _stride2_planes(jnp.asarray(ind), ho, wo, mplane)
    mask_planes = mask_planes.reshape(1, 4 * mplane)
    mask_out = _interior_mask(ho, wo, mplane)

    # block 0: stride 2 (no residual)
    y = _mbconv_stride2_call(planes, preps[0], mask_planes, mask_out, wpo=wpo)
    # blocks 1..depth-1: stride 1 with identity residual, chained padded-flat
    for prep in preps[1:]:
        y = _mbconv_stride1_call(y, prep, mask_out, wp=wpo, residual=True)

    cout = preps[-1][6].shape[0]
    y = y[:, :, :hpo * wpo].reshape(n, cout, hpo, wpo)
    return y[:, :, 1:ho + 1, 1:wo + 1]


# ---------------------------------------------------------------------------
# Deterministic synthetic parameter init (folds eval-mode BN into scale/bias)
# ---------------------------------------------------------------------------
def init_mbconv_params(key, cin, cout, expand_ratio):
    cmid = round(cin * expand_ratio)
    ks = jax.random.split(key, 15)
    eps = 1e-5

    def folded_bn(k1, k2, k3, k4, c):
        gamma = 1.0 + 0.1 * jax.random.normal(k1, (c,), jnp.float32)
        beta = 0.1 * jax.random.normal(k2, (c,), jnp.float32)
        mean = 0.1 * jax.random.normal(k3, (c,), jnp.float32)
        var = 1.0 + 0.1 * jax.random.uniform(k4, (c,), jnp.float32)
        scale = gamma / jnp.sqrt(var + eps)
        bias = beta - mean * scale
        return scale, bias

    w_exp = 0.3 * jax.random.normal(ks[0], (cin, cmid), jnp.float32)   # 1x1
    s1, b1 = folded_bn(ks[1], ks[2], ks[3], ks[4], cmid)
    w_dw = 0.3 * jax.random.normal(ks[5], (3, 3, cmid), jnp.float32)   # dw 3x3
    s2, b2 = folded_bn(ks[6], ks[7], ks[8], ks[9], cmid)
    w_pw = 0.3 * jax.random.normal(ks[10], (cmid, cout), jnp.float32)  # 1x1
    s3, b3 = folded_bn(ks[11], ks[12], ks[13], ks[14], cout)
    return (w_exp, s1, b1, w_dw, s2, b2, w_pw, s3, b3)


# ---------------------------------------------------------------------------
# Pure-JAX reference (for correctness check)
# ---------------------------------------------------------------------------
def _ref_block(x, params, *, stride, residual):
    w_exp, s1, b1, w_dw, s2, b2, w_pw, s3, b3 = params
    dn = ('NHWC', 'HWIO', 'NHWC')
    cmid = w_exp.shape[1]
    h = jax.lax.conv_general_dilated(
        x, w_exp.reshape(1, 1, *w_exp.shape), (1, 1), 'VALID',
        dimension_numbers=dn)
    h = _hswish(h * s1 + b1)
    h = jax.lax.conv_general_dilated(
        h, w_dw.reshape(3, 3, 1, cmid), (stride, stride), ((1, 1), (1, 1)),
        dimension_numbers=dn, feature_group_count=cmid)
    h = _hswish(h * s2 + b2)
    out = jax.lax.conv_general_dilated(
        h, w_pw.reshape(1, 1, *w_pw.shape), (1, 1), 'VALID',
        dimension_numbers=dn)
    out = out * s3 + b3
    if residual:
        out = out + x
    return out


def _ref_stage(x_nchw, params_list):
    x = jnp.transpose(x_nchw, (0, 2, 3, 1))
    for i, params in enumerate(params_list):
        stride = 2 if i == 0 else 1
        x = _ref_block(x, params, stride=stride, residual=(stride == 1))
    return jnp.transpose(x, (0, 3, 1, 2))


if __name__ == "__main__":
    key = jax.random.PRNGKey(0)
    N, Cin, H, W = 2, 4, 16, 16
    Cout, depth, expand_ratio = 8, 2, 4

    k_x, k_p = jax.random.split(key)
    x = jax.random.normal(k_x, (N, Cin, H, W), jnp.float32)   # NCHW like PyTorch

    params_list = []
    cin = Cin
    for pk in jax.random.split(k_p, depth):
        params_list.append(init_mbconv_params(pk, cin, Cout, expand_ratio))
        cin = Cout

    out = jax.block_until_ready(mbconv_stage(x, params_list))
    assert out.shape == (N, Cout, H // 2, W // 2), out.shape

    ref = jax.block_until_ready(_ref_stage(x, params_list))
    np.testing.assert_allclose(np.asarray(out), np.asarray(ref),
                               atol=1e-3, rtol=1e-3)
    print("KERNEL_OK")
</pallas_src>

<mosaic_0001>
module attributes {stable_mosaic.version = 11 : i64} {
  func.func @_mbconv_s2_kernel(%arg0: i32, %arg1: memref<1x4x512xf32, #tpu.memory_space<vmem>>, %arg2: memref<16x4xf32, #tpu.memory_space<vmem>>, %arg3: memref<16x1xf32, #tpu.memory_space<vmem>>, %arg4: memref<16x1xf32, #tpu.memory_space<vmem>>, %arg5: memref<16x9xf32, #tpu.memory_space<vmem>>, %arg6: memref<16x1xf32, #tpu.memory_space<vmem>>, %arg7: memref<16x1xf32, #tpu.memory_space<vmem>>, %arg8: memref<8x16xf32, #tpu.memory_space<vmem>>, %arg9: memref<8x1xf32, #tpu.memory_space<vmem>>, %arg10: memref<8x1xf32, #tpu.memory_space<vmem>>, %arg11: memref<1x512xf32, #tpu.memory_space<vmem>>, %arg12: memref<1x128xf32, #tpu.memory_space<vmem>>, %arg13: memref<1x8x128xf32, #tpu.memory_space<vmem>>) attributes {dimension_semantics = [#tpu.dimension_semantics<parallel>], iteration_bounds = array<i64: 2>, scalar_prefetch = 0 : i64, scratch_operands = 0 : i64, tpu.core_type = #tpu.core_type<tc>, window_params = [{transform_indices = @transform_0, window_bounds = array<i64: 1, 4, 512>}, {pipeline_mode = #tpu.pipeline_mode<synchronous>, transform_indices = @transform_1, window_bounds = array<i64: 16, 4>}, {pipeline_mode = #tpu.pipeline_mode<synchronous>, transform_indices = @transform_2, window_bounds = array<i64: 16, 1>}, {pipeline_mode = #tpu.pipeline_mode<synchronous>, transform_indices = @transform_3, window_bounds = array<i64: 16, 1>}, {pipeline_mode = #tpu.pipeline_mode<synchronous>, transform_indices = @transform_4, window_bounds = array<i64: 16, 9>}, {pipeline_mode = #tpu.pipeline_mode<synchronous>, transform_indices = @transform_5, window_bounds = array<i64: 16, 1>}, {pipeline_mode = #tpu.pipeline_mode<synchronous>, transform_indices = @transform_6, window_bounds = array<i64: 16, 1>}, {pipeline_mode = #tpu.pipeline_mode<synchronous>, transform_indices = @transform_7, window_bounds = array<i64: 8, 16>}, {pipeline_mode = #tpu.pipeline_mode<synchronous>, transform_indices = @transform_8, window_bounds = array<i64: 8, 1>}, {pipeline_mode = #tpu.pipeline_mode<synchronous>, transform_indices = @transform_9, window_bounds = array<i64: 8, 1>}, {pipeline_mode = #tpu.pipeline_mode<synchronous>, transform_indices = @transform_10, window_bounds = array<i64: 1, 512>}, {pipeline_mode = #tpu.pipeline_mode<synchronous>, transform_indices = @transform_11, window_bounds = array<i64: 1, 128>}, {transform_indices = @transform_12, window_bounds = array<i64: 1, 8, 128>}]} {
    %c0 = arith.constant 0 : index
    %c0_0 = arith.constant 0 : index
    %c0_1 = arith.constant 0 : index
    %0 = vector.load %arg1[%c0, %c0_0, %c0_1] : memref<1x4x512xf32, #tpu.memory_space<vmem>>, vector<1x4x512xf32>
    %1 = vector.shape_cast %0 : vector<1x4x512xf32> to vector<4x512xf32>
    %c0_2 = arith.constant 0 : index
    %c0_3 = arith.constant 0 : index
    %2 = vector.load %arg2[%c0_2, %c0_3] : memref<16x4xf32, #tpu.memory_space<vmem>>, vector<16x4xf32>
    %cst = arith.constant dense<0.000000e+00> : vector<16x512xf32>
    %3 = tpu.matmul %2, %1, %cst {dimension_numbers = #tpu.dot_dimension_numbers<[1], [0], [0], [1], [0, 0, 1, 1], [], []>} : vector<16x4xf32>, vector<4x512xf32>, vector<16x512xf32> -> vector<16x512xf32>
    %c0_4 = arith.constant 0 : index
    %c0_5 = arith.constant 0 : index
    %4 = vector.load %arg3[%c0_4, %c0_5] : memref<16x1xf32, #tpu.memory_space<vmem>>, vector<16x1xf32>
    %5 = vector.broadcast %4 : vector<16x1xf32> to vector<16x512xf32>
    %6 = arith.mulf %3, %5 : vector<16x512xf32>
    %c0_6 = arith.constant 0 : index
    %c0_7 = arith.constant 0 : index
    %7 = vector.load %arg4[%c0_6, %c0_7] : memref<16x1xf32, #tpu.memory_space<vmem>>, vector<16x1xf32>
    %8 = vector.broadcast %7 : vector<16x1xf32> to vector<16x512xf32>
    %9 = arith.addf %6, %8 : vector<16x512xf32>
    %cst_8 = arith.constant 3.000000e+00 : f32
    %10 = vector.broadcast %cst_8 : f32 to vector<16x512xf32>
    %11 = arith.addf %9, %10 : vector<16x512xf32>
    %cst_9 = arith.constant 0.000000e+00 : f32
    %cst_10 = arith.constant 6.000000e+00 : f32
    %12 = vector.broadcast %cst_9 : f32 to vector<16x512xf32>
    %13 = arith.maximumf %12, %11 : vector<16x512xf32>
    %14 = vector.broadcast %cst_10 : f32 to vector<16x512xf32>
    %15 = arith.minimumf %14, %13 : vector<16x512xf32>
    %16 = arith.mulf %9, %15 : vector<16x512xf32>
    %cst_11 = arith.constant 0.166666672 : f32
    %17 = vector.broadcast %cst_11 : f32 to vector<16x512xf32>
    %18 = arith.mulf %16, %17 : vector<16x512xf32>
    %c0_12 = arith.constant 0 : index
    %c0_13 = arith.constant 0 : index
    %19 = vector.load %arg11[%c0_12, %c0_13] : memref<1x512xf32, #tpu.memory_space<vmem>>, vector<1x512xf32>
    %20 = vector.broadcast %19 : vector<1x512xf32> to vector<16x512xf32>
    %21 = arith.mulf %18, %20 : vector<16x512xf32>
    %22 = vector.extract_strided_slice %21 {offsets = [0, 0], sizes = [16, 128], strides = [1, 1]} : vector<16x512xf32> to vector<16x128xf32>
    %23 = vector.extract_strided_slice %21 {offsets = [0, 128], sizes = [16, 128], strides = [1, 1]} : vector<16x512xf32> to vector<16x128xf32>
    %24 = vector.extract_strided_slice %21 {offsets = [0, 256], sizes = [16, 128], strides = [1, 1]} : vector<16x512xf32> to vector<16x128xf32>
    %25 = vector.extract_strided_slice %21 {offsets = [0, 384], sizes = [16, 128], strides = [1, 1]} : vector<16x512xf32> to vector<16x128xf32>
    %c0_14 = arith.constant 0 : index
    %c0_15 = arith.constant 0 : index
    %26 = vector.load %arg5[%c0_14, %c0_15] : memref<16x9xf32, #tpu.memory_space<vmem>>, vector<16x9xf32>
    %27 = vector.extract_strided_slice %26 {offsets = [0, 0], sizes = [16, 1], strides = [1, 1]} : vector<16x9xf32> to vector<16x1xf32>
    %28 = vector.broadcast %27 : vector<16x1xf32> to vector<16x128xf32>
    %29 = arith.mulf %28, %22 : vector<16x128xf32>
    %30 = vector.extract_strided_slice %26 {offsets = [0, 1], sizes = [16, 1], strides = [1, 1]} : vector<16x9xf32> to vector<16x1xf32>
    %31 = vector.broadcast %30 : vector<16x1xf32> to vector<16x128xf32>
    %32 = arith.mulf %31, %23 : vector<16x128xf32>
    %33 = arith.addf %29, %32 : vector<16x128xf32>
    %c127_i32 = arith.constant 127 : i32
    %34 = tpu.dynamic_rotate %22 by %c127_i32 dim 1 : vector<16x128xf32>, i32 -> vector<16x128xf32>
    %35 = vector.extract_strided_slice %26 {offsets = [0, 2], sizes = [16, 1], strides = [1, 1]} : vector<16x9xf32> to vector<16x1xf32>
    %36 = vector.broadcast %35 : vector<16x1xf32> to vector<16x128xf32>
    %37 = arith.mulf %36, %34 : vector<16x128xf32>
    %38 = arith.addf %33, %37 : vector<16x128xf32>
    %39 = vector.extract_strided_slice %26 {offsets = [0, 3], sizes = [16, 1], strides = [1, 1]} : vector<16x9xf32> to vector<16x1xf32>
    %40 = vector.broadcast %39 : vector<16x1xf32> to vector<16x128xf32>
    %41 = arith.mulf %40, %24 : vector<16x128xf32>
    %42 = arith.addf %38, %41 : vector<16x128xf32>
    %43 = vector.extract_strided_slice %26 {offsets = [0, 4], sizes = [16, 1], strides = [1, 1]} : vector<16x9xf32> to vector<16x1xf32>
    %44 = vector.broadcast %43 : vector<16x1xf32> to vector<16x128xf32>
    %45 = arith.mulf %44, %25 : vector<16x128xf32>
    %46 = arith.addf %42, %45 : vector<16x128xf32>
    %c127_i32_16 = arith.constant 127 : i32
    %47 = tpu.dynamic_rotate %24 by %c127_i32_16 dim 1 : vector<16x128xf32>, i32 -> vector<16x128xf32>
    %48 = vector.extract_strided_slice %26 {offsets = [0, 5], sizes = [16, 1], strides = [1, 1]} : vector<16x9xf32> to vector<16x1xf32>
    %49 = vector.broadcast %48 : vector<16x1xf32> to vector<16x128xf32>
    %50 = arith.mulf %49, %47 : vector<16x128xf32>
    %51 = arith.addf %46, %50 : vector<16x128xf32>
    %c118_i32 = arith.constant 118 : i32
    %52 = tpu.dynamic_rotate %22 by %c118_i32 dim 1 : vector<16x128xf32>, i32 -> vector<16x128xf32>
    %53 = vector.extract_strided_slice %26 {offsets = [0, 6], sizes = [16, 1], strides = [1, 1]} : vector<16x9xf32> to vector<16x1xf32>
    %54 = vector.broadcast %53 : vector<16x1xf32> to vector<16x128xf32>
    %55 = arith.mulf %54, %52 : vector<16x128xf32>
    %56 = arith.addf %51, %55 : vector<16x128xf32>
    %c118_i32_17 = arith.constant 118 : i32
    %57 = tpu.dynamic_rotate %23 by %c118_i32_17 dim 1 : vector<16x128xf32>, i32 -> vector<16x128xf32>
    %58 = vector.extract_strided_slice %26 {offsets = [0, 7], sizes = [16, 1], strides = [1, 1]} : vector<16x9xf32> to vector<16x1xf32>
    %59 = vector.broadcast %58 : vector<16x1xf32> to vector<16x128xf32>
    %60 = arith.mulf %59, %57 : vector<16x128xf32>
    %61 = arith.addf %56, %60 : vector<16x128xf32>
    %c117_i32 = arith.constant 117 : i32
    %62 = tpu.dynamic_rotate %22 by %c117_i32 dim 1 : vector<16x128xf32>, i32 -> vector<16x128xf32>
    %63 = vector.extract_strided_slice %26 {offsets = [0, 8], sizes = [16, 1], strides = [1, 1]} : vector<16x9xf32> to vector<16x1xf32>
    %64 = vector.broadcast %63 : vector<16x1xf32> to vector<16x128xf32>
    %65 = arith.mulf %64, %62 : vector<16x128xf32>
    %66 = arith.addf %61, %65 : vector<16x128xf32>
    %c0_18 = arith.constant 0 : index
    %c0_19 = arith.constant 0 : index
    %67 = vector.load %arg6[%c0_18, %c0_19] : memref<16x1xf32, #tpu.memory_space<vmem>>, vector<16x1xf32>
    %68 = vector.broadcast %67 : vector<16x1xf32> to vector<16x128xf32>
    %69 = arith.mulf %66, %68 : vector<16x128xf32>
    %c0_20 = arith.constant 0 : index
    %c0_21 = arith.constant 0 : index
    %70 = vector.load %arg7[%c0_20, %c0_21] : memref<16x1xf32, #tpu.memory_space<vmem>>, vector<16x1xf32>
    %71 = vector.broadcast %70 : vector<16x1xf32> to vector<16x128xf32>
    %72 = arith.addf %69, %71 : vector<16x128xf32>
    %cst_22 = arith.constant 3.000000e+00 : f32
    %73 = vector.broadcast %cst_22 : f32 to vector<16x128xf32>
    %74 = arith.addf %72, %73 : vector<16x128xf32>
    %cst_23 = arith.constant 0.000000e+00 : f32
    %cst_24 = arith.constant 6.000000e+00 : f32
    %75 = vector.broadcast %cst_23 : f32 to vector<16x128xf32>
    %76 = arith.maximumf %75, %74 : vector<16x128xf32>
    %77 = vector.broadcast %cst_24 : f32 to vector<16x128xf32>
    %78 = arith.minimumf %77, %76 : vector<16x128xf32>
    %79 = arith.mulf %72, %78 : vector<16x128xf32>
    %cst_25 = arith.constant 0.166666672 : f32
    %80 = vector.broadcast %cst_25 : f32 to vector<16x128xf32>
    %81 = arith.mulf %79, %80 : vector<16x128xf32>
    %c0_26 = arith.constant 0 : index
    %c0_27 = arith.constant 0 : index
    %82 = vector.load %arg8[%c0_26, %c0_27] : memref<8x16xf32, #tpu.memory_space<vmem>>, vector<8x16xf32>
    %cst_28 = arith.constant dense<0.000000e+00> : vector<8x128xf32>
    %83 = tpu.matmul %82, %81, %cst_28 {dimension_numbers = #tpu.dot_dimension_numbers<[1], [0], [0], [1], [0, 0, 1, 1], [], []>} : vector<8x16xf32>, vector<16x128xf32>, vector<8x128xf32> -> vector<8x128xf32>
    %c0_29 = arith.constant 0 : index
    %c0_30 = arith.constant 0 : index
    %84 = vector.load %arg9[%c0_29, %c0_30] : memref<8x1xf32, #tpu.memory_space<vmem>>, vector<8x1xf32>
    %85 = vector.broadcast %84 : vector<8x1xf32> to vector<8x128xf32>
    %86 = arith.mulf %83, %85 : vector<8x128xf32>
    %c0_31 = arith.constant 0 : index
    %c0_32 = arith.constant 0 : index
    %87 = vector.load %arg10[%c0_31, %c0_32] : memref<8x1xf32, #tpu.memory_space<vmem>>, vector<8x1xf32>
    %88 = vector.broadcast %87 : vector<8x1xf32> to vector<8x128xf32>
    %89 = arith.addf %86, %88 : vector<8x128xf32>
    %c0_33 = arith.constant 0 : index
    %c0_34 = arith.constant 0 : index
    %90 = vector.load %arg12[%c0_33, %c0_34] : memref<1x128xf32, #tpu.memory_space<vmem>>, vector<1x128xf32>
    %91 = vector.broadcast %90 : vector<1x128xf32> to vector<8x128xf32>
    %92 = arith.mulf %89, %91 : vector<8x128xf32>
    %c0_35 = arith.constant 0 : index
    %c0_36 = arith.constant 0 : index
    %c0_37 = arith.constant 0 : index
    %93 = vector.load %arg13[%c0_35, %c0_36, %c0_37] : memref<1x8x128xf32, #tpu.memory_space<vmem>>, vector<1x8x128xf32>
    %94 = vector.shape_cast %93 : vector<1x8x128xf32> to vector<8x128xf32>
    %95 = vector.shape_cast %92 : vector<8x128xf32> to vector<1x8x128xf32>
    tpu.vector_store %arg13[%c0_35, %c0_36, %c0_37], %95 {strides = array<i32>} : memref<1x8x128xf32, #tpu.memory_space<vmem>>, vector<1x8x128xf32>,
    return
  }
  func.func @transform_0(%arg0: i32) -> (i32, i32, i32) {
    %c0_i32 = arith.constant 0 : i32
    %c0_i32_0 = arith.constant 0 : i32
    %c0_i32_1 = arith.constant 0 : i32
    return %arg0, %c0_i32, %c0_i32_0 : i32, i32, i32
  }
  func.func @transform_1(%arg0: i32) -> (i32, i32) {
    %c0_i32 = arith.constant 0 : i32
    %c0_i32_0 = arith.constant 0 : i32
    %c0_i32_1 = arith.constant 0 : i32
    return %c0_i32, %c0_i32_0 : i32, i32
  }
  func.func @transform_2(%arg0: i32) -> (i32, i32) {
    %c0_i32 = arith.constant 0 : i32
    %c0_i32_0 = arith.constant 0 : i32
    %c0_i32_1 = arith.constant 0 : i32
    return %c0_i32, %c0_i32_0 : i32, i32
  }
  func.func @transform_3(%arg0: i32) -> (i32, i32) {
    %c0_i32 = arith.constant 0 : i32
    %c0_i32_0 = arith.constant 0 : i32
    %c0_i32_1 = arith.constant 0 : i32
    return %c0_i32, %c0_i32_0 : i32, i32
  }
  func.func @transform_4(%arg0: i32) -> (i32, i32) {
    %c0_i32 = arith.constant 0 : i32
    %c0_i32_0 = arith.constant 0 : i32
    %c0_i32_1 = arith.constant 0 : i32
    return %c0_i32, %c0_i32_0 : i32, i32
  }
  func.func @transform_5(%arg0: i32) -> (i32, i32) {
    %c0_i32 = arith.constant 0 : i32
    %c0_i32_0 = arith.constant 0 : i32
    %c0_i32_1 = arith.constant 0 : i32
    return %c0_i32, %c0_i32_0 : i32, i32
  }
  func.func @transform_6(%arg0: i32) -> (i32, i32) {
    %c0_i32 = arith.constant 0 : i32
    %c0_i32_0 = arith.constant 0 : i32
    %c0_i32_1 = arith.constant 0 : i32
    return %c0_i32, %c0_i32_0 : i32, i32
  }
  func.func @transform_7(%arg0: i32) -> (i32, i32) {
    %c0_i32 = arith.constant 0 : i32
    %c0_i32_0 = arith.constant 0 : i32
    %c0_i32_1 = arith.constant 0 : i32
    return %c0_i32, %c0_i32_0 : i32, i32
  }
  func.func @transform_8(%arg0: i32) -> (i32, i32) {
    %c0_i32 = arith.constant 0 : i32
    %c0_i32_0 = arith.constant 0 : i32
    %c0_i32_1 = arith.constant 0 : i32
    return %c0_i32, %c0_i32_0 : i32, i32
  }
  func.func @transform_9(%arg0: i32) -> (i32, i32) {
    %c0_i32 = arith.constant 0 : i32
    %c0_i32_0 = arith.constant 0 : i32
    %c0_i32_1 = arith.constant 0 : i32
    return %c0_i32, %c0_i32_0 : i32, i32
  }
  func.func @transform_10(%arg0: i32) -> (i32, i32) {
    %c0_i32 = arith.constant 0 : i32
    %c0_i32_0 = arith.constant 0 : i32
    %c0_i32_1 = arith.constant 0 : i32
    return %c0_i32, %c0_i32_0 : i32, i32
  }
  func.func @transform_11(%arg0: i32) -> (i32, i32) {
    %c0_i32 = arith.constant 0 : i32
    %c0_i32_0 = arith.constant 0 : i32
    %c0_i32_1 = arith.constant 0 : i32
    return %c0_i32, %c0_i32_0 : i32, i32
  }
  func.func @transform_12(%arg0: i32) -> (i32, i32, i32) {
    %c0_i32 = arith.constant 0 : i32
    %c0_i32_0 = arith.constant 0 : i32
    %c0_i32_1 = arith.constant 0 : i32
    return %arg0, %c0_i32, %c0_i32_0 : i32, i32, i32
  }
}

</mosaic_0001>

<bundles_post_ra>
// kernel: tpu_custom_call.1
= control target key start
LH: loop header
LB: loop body
LE: loop exit
PB: predicated region body
PF: predicated region fallthrough
CT: control target
= control target key end

     0   :  { %s1461_s0 = inlined_call_operand.vmem [shape: f32[2,4,512], index: 0, kind: input, shape index: {}]   ;;  %s1462_s1 = inlined_call_operand.vmem [shape: f32[16,4], index: 1, kind: input, shape index: {}]   ;;  %s1463_s2 = inlined_call_operand.vmem [shape: f32[16,1], index: 2, kind: input, shape index: {}]   ;;  %s1464_s3 = inlined_call_operand.vmem [shape: f32[16,1], index: 3, kind: input, shape index: {}]   ;;  %s1465_s4 = inlined_call_operand.vmem [shape: f32[16,9], index: 4, kind: input, shape index: {}]   ;;  %s1466_s5 = inlined_call_operand.vmem [shape: f32[16,1], index: 5, kind: input, shape index: {}]   ;;  %s1467_s6 = inlined_call_operand.vmem [shape: f32[16,1], index: 6, kind: input, shape index: {}]   ;;  %s1468_s7 = inlined_call_operand.vmem [shape: f32[8,16], index: 7, kind: input, shape index: {}]   ;;  %s1469_s8 = inlined_call_operand.vmem [shape: f32[8,1], index: 8, kind: input, shape index: {}]   ;;  %s1470_s9 = inlined_call_operand.vmem [shape: f32[8,1], index: 9, kind: input, shape index: {}]   ;;  %s1471_s10 = inlined_call_operand.vmem [shape: f32[1,512], index: 10, kind: input, shape index: {}]   ;;  %s1472_s11 = inlined_call_operand.vmem [shape: f32[1,128], index: 11, kind: input, shape index: {}]   ;;  %s1473_s12 = inlined_call_operand.hbm [shape: f32[2,8,128], index: 12, kind: output, shape index: {}]  }
   0x1   :  { %1475 = sst [smem:[#allocation7_spill]] %s1461_s0 }
   0x2   :  { %17 = vsyncpa [#allocation3], 0 }
   0x3   :  { %19 = vsyncpa [#allocation3 + $0x1], 0  ;;  %s1285_s21 = smov 0   ;;  %s1287_s22 = smov 0  }
   0x4   :  { %s1289_s23 = smov 0   ;;  %s1291_s24 = smov 0  }
   0x5 LB: > { %1476 = sst [smem:[#allocation5_spill]] %s1199_s23  ;;  %s1306_s25 = sadd.s32 4294967295, %s1203_s24   ;;  %s1203_s24 = sphi %s1291_s24, %s1485_s24   ;;  %s1199_s23 = sphi %s1289_s23, %s1482_s23   ;;  %s1195_s22 = sphi %s1287_s22, %s1484_s22   ;;  %s1191_s21 = sphi %s1285_s21, %s1483_s21  }
   0x6   : > { %s1039_s26 = sadd.s32 4294967294, %s1203_s24   ;;  %s1310_s27 = sadd.s32 1, %s1203_s24  }
   0x7   : > { %s289_s28 = sadd.s32 1, %s1199_s23  ;;  %s286_s29 = ssub.s32 %s1203_s24, %s1310_s27 }
   0x8   : > { %p299_p0 = scmp.ne.s32.totalorder %s1199_s23, %s1195_s22  ;;  %p287_p1 = scmp.eq.s32.totalorder %s286_s29, 0 }
   0x9   : > { %p300_p2 = scmp.eq.s32.totalorder %s1306_s25, 1  ;;  %p305_p3 = scmp.ne.s32.totalorder %s1195_s22, %s1191_s21 }
   0xa   : > { %p306_p4 = scmp.eq.s32.totalorder %s1039_s26, 1  ;;  %p1042_p7 = scmp.ge.s32.totalorder %s1203_s24, 1 }
   0xb   : > { %s1321_s30 = scalar_select %p287_p1, %s1199_s23, %s289_s28  }
   0xc   : > { %p1323_p5 = por %p300_p2, %p299_p0  ;;  %p1327_p6 = por %p306_p4, %p305_p3 }
   0xd   : > { %1477 = sst [smem:[#allocation6_spill]] %s1321_s30  ;;  %p365_p8 = scmp.lt.s32.totalorder %s1203_s24, 3 }
   0xf   : > { %p366_p9 = pnand %p1042_p7, %p365_p8 }
  0x10   : > { %p407_p10 = scmp.lt.s32.totalorder (!%p366_p9), %s1306_s25, 1  ;;  %s1480_s0 = sld [smem:[#allocation7_spill]] (!%p366_p9) }
  0x11   : > { %369 = sbr.rel (%p366_p9) target bundleno = 628 (0x274), region = 68  ;;  %s1215_s18 = smov (!%p366_p9), 127  }
  0x12   : > { %s1216_s19 = smov (!%p366_p9), 118   ;;  %s1217_s15 = smov (!%p366_p9), 117  }
  0x13   : > { %s404_s30 = sand.u32 (!%p366_p9), 1, %s1195_s22   ;;  %s1219_s28 = smov (!%p366_p9), [#allocation2]  }
  0x14   : > { %s1147_s29 = sshll.u32 (!%p366_p9), %s1219_s28, 4  ;;  %s1148_s29 = int_to_ptr.vmem [resolvable:$false] %s1147_s29 }
  0x16   : > { %v1205_v0 = vmov 0.0   ;;  %v591_v1 = vld [vmem:[%s1463_s2 + $0x8] sm:$0xff]  ;;  %s408_s17 = scalar_select %p407_p10, %s1306_s25, 1  ;;  %v1206_v2 = vmov 0   ;;  %v590_v4 = vld [vmem:[%s1463_s2] sm:$0xff]  ;;  %vm427_vm0 = vcmask 1043456   ;;  %v672_v23 = vlaneseq }
  0x17   : > { %500 = vmatprep.mubr.f32.mxu0 %v1205_v0  ;;  %577 = vmatprep.mubr.f32.mxu1 %v1205_v0  ;;  %v611_v3 = vld [vmem:[%s1464_s3 + $0x8] sm:$0xff]  ;;  %v610_v5 = vld [vmem:[%s1464_s3] sm:$0xff]  ;;  %vm420_vm1 = vcmask 31744   ;;  %v1207_v13 = vmov 1   ;;  %v1208_v15 = vmov 2   ;;  %v1209_v16 = vmov 3  }
  0x18   : > { %1124 = vset.pattern.permute.xlu0 %v1206_v2  ;;  %1125 = vset.pattern.permute.xlu1 %v1206_v2  ;;  %s1060_s20 = sshll.u32 %s408_s17, 4  ;;  %v414_v10 = vld [vmem:[%s1462_s1] sm:$0xff]  ;;  %v701_v11 = vld [vmem:[%s1465_s4 + $0x8] sm:$0xff]  ;;  %v1210_v17 = vmov 4   ;;  %v1211_v18 = vmov 5   ;;  %v1212_v19 = vmov 7  }
  0x19   : > { %599 = vperm.xlu0 %1124, %v591_v1   ;;  %619 = vperm.xlu1 %1125, %v611_v3   ;;  %s411_s23 = scalar_lea.vmem %s1480_s0, %s1060_s20  ;;  %v415_v12 = vld [vmem:[%s1462_s1 + $0x8] sm:$0xff]  ;;  %v700_v14 = vld [vmem:[%s1465_s4] sm:$0xff]  ;;  %v1213_v20 = vmov 6   ;;  %v1214_v21 = vmov 8   ;;  %v673_v24 = vshrl.u32 %v672_v23, 7  ;;  %vm1218_vm2 = vmmov 0  }
  0x1a   : > { %v412_v6 = vld [vmem:[%s411_s23] sm:$0xff]  ;;  %v413_v7 = vld [vmem:[%s411_s23 + $0x8] sm:$0xff]  ;;  %vm869_vm3 = vcmask 130048   ;;  %s1043_s20 = sshll.u32 %s404_s30, 3 }
  0x1b   : > { %v418_v8 = vcombine.high %v412_v6, %v412_v6  ;;  %v419_v9 = vcombine.high %v413_v7, %v413_v7  ;;  %v831_v22 = vld [vmem:[%s1466_s5 + $0x8] sm:$0xff]  ;;  %v686_v25 = vsub.s32 3, %v673_v24  ;;  %v670_v26 = vld [vmem:[%s1471_s10] sm:$0xf]  ;;  %v674_v48 = vsub.s32 0, %v673_v24  ;;  %s406_s16 = scalar_lea.vmem [#allocation2], %s1043_s20 }
  0x1c   : > { %v682_v52 = vsub.s32 2, %v673_v24  ;;  %v678_v60 = vsub.s32 1, %v673_v24  ;;  %s980_s17 = sshll.u32 %s406_s16, 4  ;;  %s981_s17 = int_to_ptr.vmem [resolvable:$true] %s980_s17 }
  0x1d   : > { %594 = vperm.xlu0 %1124, %v590_v4   ;;  %614 = vperm.xlu1 %1125, %v610_v5   ;;  %v1381_v27 = vrot.slane %v670_v26, %v686_v25  ;;  %s1143_s0 = scalar_lea.vmem %s981_s17, 128  ;;  %p1150_p0 = scmp.lt.s32.totalorder %s981_s17, %s1148_s29 }
  0x1e   : > { %1046 = vmatprep.subr.msk.mxu0 %vm427_vm0, %v418_v8  ;;  %1050 = vmatprep.subr.msk.mxu1 %vm427_vm0, %v419_v9  ;;  %p1144_p11 = scmp.ne.s32.totalorder %s981_s17, %s1143_s0 }
  0x1f   : > { %1047 = vmatpush1.msk.msra.mxu0 %vm427_vm0, %v412_v6  ;;  %1051 = vmatpush1.msk.msra.mxu1 %vm427_vm0, %v413_v7 }
  0x20   : > { %1048 = vmatmul.mubr.msk.f32.vlgmr.msra.gmra.mxu0 %vm420_vm1, %v414_v10  ;;  %1052 = vmatmul.mubr.msk.f32.vlgmr.msra.gmra.mxu1 %vm420_vm1, %v414_v10  ;;  %p1145_p12 = pnand %p1144_p11, %p1323_p5 }
  0x21   : > { %506 = vmatprep.mubr.f32.mxu0 %v1205_v0  ;;  %583 = vmatprep.mubr.f32.mxu1 %v1205_v0 }
  0x22   : > { %709 = vperm.xlu0 %1124, %v701_v11   ;;  %1126 = vset.pattern.permute.xlu1 %v1207_v13  ;;  %p1146_p13 = pneg %p1145_p12 }
  0x23   : > { %719 = vperm.xlu1 %1126, %v701_v11   ;;  %1064 = vmatprep.subr.mxu0 %v1205_v0 }
  0x24   : > { %1049 = vmatmul.mubr.msk.f32.gmra.mxu0 %vm420_vm1, %v415_v12  ;;  %1053 = vmatmul.mubr.msk.f32.gmra.mxu1 %vm420_vm1, %v415_v12 }
  0x25   : > { %1068 = vmatprep.mubr.msk.f32.mxu0 %vm1218_vm2, %v1205_v0 }
  0x26   : > { %704 = vperm.xlu0 %1124, %v700_v14  }
  0x27   : > { %715 = vperm.xlu1 %1126, %v700_v14  }
  0x2a   : > { %1127 = vset.pattern.permute.xlu0 %v1208_v15 }
  0x2b   : > { %735 = vperm.xlu0 %1127, %v701_v11   ;;  %1128 = vset.pattern.permute.xlu1 %v1208_v15 }
  0x2c   : > { %731 = vperm.xlu1 %1128, %v700_v14  }
  0x2f   : > { %1130 = vset.pattern.permute.xlu0 %v1209_v16 }
  0x30   : > { %743 = vperm.xlu0 %1130, %v700_v14   ;;  %1129 = vset.pattern.permute.xlu1 %v1209_v16 }
  0x31   : > { %747 = vperm.xlu1 %1129, %v701_v11  }
  0x34   : > { %1132 = vset.pattern.permute.xlu0 %v1210_v17 }
  0x35   : > { %755 = vperm.xlu0 %1132, %v700_v14   ;;  %1131 = vset.pattern.permute.xlu1 %v1210_v17  ;;  %v679_v17 = vrot.slane %v670_v26, %v678_v60 }
  0x36   : > { %759 = vperm.xlu1 %1131, %v701_v11  }
  0x39   : > { %1134 = vset.pattern.permute.xlu0 %v1211_v18 }
  0x3a   : > { %1133 = vset.pattern.permute.xlu1 %v1211_v18  ;;  %771 = vperm.xlu0 %1134, %v700_v14  }
  0x3b   : > { %775 = vperm.xlu1 %1133, %v701_v11  }
  0x3e   : > { %1136 = vset.pattern.permute.xlu0 %v1212_v19 }
  0x3f   : > { %1135 = vset.pattern.permute.xlu1 %v1213_v20  ;;  %807 = vperm.xlu0 %1136, %v701_v11  }
  0x40   : > { %791 = vperm.xlu1 %1135, %v701_v11  }
  0x43   : > { %1138 = vset.pattern.permute.xlu0 %v1214_v21  ;;  %v683_v21 = vrot.slane %v670_v26, %v682_v52 }
  0x44   : > { %787 = vperm.xlu1 %1135, %v700_v14   ;;  %823 = vperm.xlu0 %1138, %v701_v11  }
  0x48   : > { %1137 = vset.pattern.permute.xlu1 %v1212_v19  ;;  %819 = vperm.xlu0 %1138, %v700_v14  }
  0x49   : > { %803 = vperm.xlu1 %1137, %v700_v14  }
  0x4c   : > { %1140 = vset.pattern.permute.xlu0 %v1206_v2 }
  0x4d   : > { %1139 = vset.pattern.permute.xlu1 %v1206_v2  ;;  %v675_v2 = vrot.slane %v670_v26, %v674_v48  ;;  %v830_v48 = vld [vmem:[%s1466_s5] sm:$0xff] }
  0x4e   : > { %839 = vperm.xlu1 %1139, %v831_v22  }
  0x94   : > { %v1383_v28 = vpop.permute.xlu0 %599  ;;  %v1385_v29 = vpop.permute.xlu1 %619 }
  0x98   : > { %v595_v30 = vpop.permute.xlu0 %594  ;;  %v615_v33 = vpop.permute.xlu1 %614 }
  0x9d   : > { %v710_v10 = vpop.permute.xlu0 %709 }
  0x9e   : > { %v720_v12 = vpop.permute.xlu1 %719 }
  0xe0   : > { %v502_v31 = vpop.f32.mrf.mxu0  ;;  %v579_v32 = vpop.f32.mrf.mxu1 }
  0xe1   : > { %v602_v34 = vmul.f32 %v595_v30, %v502_v31  ;;  %v604_v35 = vmul.f32 %v595_v30, %v579_v32 }
  0xe2   : > { %v504_v36 = vpop.f32.mrf.mxu0  ;;  %v581_v37 = vpop.f32.mrf.mxu1 }
  0xe3   : > { %v622_v38 = vadd.f32 %v615_v33, %v602_v34  ;;  %v624_v39 = vadd.f32 %v615_v33, %v604_v35  ;;  %v603_v40 = vmul.f32 %v595_v30, %v504_v36  ;;  %v605_v41 = vmul.f32 %v595_v30, %v581_v37  ;;  %v705_v34 = vpop.permute.xlu0 %704  ;;  %v716_v37 = vpop.permute.xlu1 %715 }
  0xe4   : > { %v508_v42 = vpop.f32.mrf.mxu0  ;;  %v585_v43 = vpop.f32.mrf.mxu1 }
  0xe5   : > { %v630_v44 = vadd.f32 3.0, %v622_v38  ;;  %v632_v45 = vadd.f32 3.0, %v624_v39  ;;  %v623_v46 = vadd.f32 %v615_v33, %v603_v40  ;;  %v625_v47 = vadd.f32 %v615_v33, %v605_v41 }
  0xe6   : > { %v606_v49 = vmul.f32 %v1383_v28, %v508_v42  ;;  %v608_v50 = vmul.f32 %v1383_v28, %v585_v43  ;;  %v510_v51 = vpop.f32.mrf.mxu0 }
  0xe7   : > { %v638_v53 = vmax.f32 %v630_v44, 0.0  ;;  %v640_v54 = vmax.f32 %v632_v45, 0.0  ;;  %v631_v55 = vadd.f32 3.0, %v623_v46  ;;  %v633_v56 = vadd.f32 3.0, %v625_v47 }
  0xe8   : > { %v626_v57 = vadd.f32 %v1385_v29, %v606_v49  ;;  %v628_v58 = vadd.f32 %v1385_v29, %v608_v50  ;;  %v607_v59 = vmul.f32 %v1383_v28, %v510_v51  ;;  %v844_v51 = vld [vmem:[%s1467_s6] sm:$0xff] }
  0xe9   : > { %v646_v61 = vmin.f32 %v638_v53, 6.0  ;;  %v648_v62 = vmin.f32 %v640_v54, 6.0  ;;  %v639_v63 = vmax.f32 %v631_v55, 0.0  ;;  %v641_v1 = vmax.f32 %v633_v56, 0.0  ;;  %v950_v53 = vld [vmem:[%s1470_s9] sm:$0xff]  ;;  %v845_v54 = vld [vmem:[%s1467_s6 + $0x8] sm:$0xff]  ;;  %v732_v56 = vpop.permute.xlu1 %731 }
  0xea   : > { %v634_v3 = vadd.f32 3.0, %v626_v57  ;;  %v636_v4 = vadd.f32 3.0, %v628_v58  ;;  %v627_v5 = vadd.f32 %v1385_v29, %v607_v59  ;;  %v943_v55 = vld [vmem:[%s1469_s8] sm:$0xff] }
  0xeb   : > { %v654_v6 = vmul.f32 %v646_v61, %v622_v38  ;;  %v656_v7 = vmul.f32 %v648_v62, %v624_v39  ;;  %v647_v8 = vmin.f32 %v639_v63, 6.0  ;;  %v649_v9 = vmin.f32 %v641_v1, 6.0  ;;  %v736_v61 = vpop.permute.xlu0 %735  ;;  %v587_v62 = vpop.f32.mrf.mxu1 }
  0xec   : > { %v642_v11 = vmax.f32 %v634_v3, 0.0  ;;  %v635_v13 = vadd.f32 3.0, %v627_v5  ;;  %v644_v19 = vmax.f32 %v636_v4, 0.0 }
  0xed   : > { %v662_v14 = vmul.f32 0.16666667, %v654_v6  ;;  %v655_v15 = vmul.f32 %v647_v8, %v623_v46  ;;  %v657_v16 = vmul.f32 %v649_v9, %v625_v47  ;;  %v664_v24 = vmul.f32 0.16666667, %v656_v7 }
  0xee   : > { %v650_v18 = vmin.f32 %v642_v11, 6.0  ;;  %v643_v20 = vmax.f32 %v635_v13, 0.0  ;;  %v652_v38 = vmin.f32 %v644_v19, 6.0 }
  0xef   : > { %v692_v22 = vmul.f32 %v675_v2, %v662_v14  ;;  %v663_v23 = vmul.f32 0.16666667, %v655_v15  ;;  %v665_v25 = vmul.f32 0.16666667, %v657_v16  ;;  %v694_v40 = vmul.f32 %v683_v21, %v664_v24  ;;  %v744_v1 = vpop.permute.xlu0 %743 }
  0xf0   : > { %v658_v30 = vmul.f32 %v650_v18, %v626_v57  ;;  %v651_v31 = vmin.f32 %v643_v20, 6.0  ;;  %v660_v45 = vmul.f32 %v652_v38, %v628_v58  ;;  %v748_v57 = vpop.permute.xlu1 %747 }
  0xf1   : > { %v693_v32 = vmul.f32 %v679_v17, %v663_v23  ;;  %726 = vrot.lane.b32.xlu1 %v692_v22, %s1215_s18  ;;  %v1395_v33 = vmul.f32 %v1381_v27, %v665_v25  ;;  %v712_v39 = vmul.f32 %v705_v34, %v692_v22  ;;  %v750_v14 = vmul.f32 %v744_v1, %v694_v40 }
  0xf2   : > { %v666_v35 = vmul.f32 0.16666667, %v658_v30  ;;  %v659_v36 = vmul.f32 %v651_v31, %v627_v5  ;;  %v668_v50 = vmul.f32 0.16666667, %v660_v45 }
  0xf3   : > { %v722_v26 = vmul.f32 %v716_v37, %v693_v32  ;;  %798 = vrot.lane.b32.xlu0 %v693_v32, %s1216_s19  ;;  %v756_v5 = vpop.permute.xlu0 %755 }
  0xf4   : > { %v696_v41 = vmul.f32 %v675_v2, %v666_v35  ;;  %v667_v42 = vmul.f32 0.16666667, %v659_v36  ;;  %v698_v52 = vmul.f32 %v683_v21, %v668_v50  ;;  %v760_v58 = vpop.permute.xlu1 %759  ;;  %v609_v2 = vmul.f32 %v1383_v28, %v587_v62 }
  0xf5   : > { %v724_v43 = vadd.f32 %v722_v26, %v712_v39  ;;  %766 = vrot.lane.b32.xlu1 %v694_v40, %s1215_s18  ;;  %v762_v18 = vmul.f32 %v756_v5, %v1395_v33 }
  0xf6   : > { %v697_v44 = vmul.f32 %v679_v17, %v667_v42  ;;  %v713_v47 = vmul.f32 %v710_v10, %v696_v41  ;;  %v629_v4 = vadd.f32 %v1385_v29, %v609_v2  ;;  %v751_v30 = vmul.f32 %v748_v57, %v698_v52 }
  0xf7   : > { %v772_v7 = vpop.permute.xlu0 %771 }
  0xf8   : > { %800 = vrot.lane.b32.xlu0 %v697_v44, %s1216_s19  ;;  %v723_v46 = vmul.f32 %v720_v12, %v697_v44  ;;  %v776_v59 = vpop.permute.xlu1 %775  ;;  %v637_v6 = vadd.f32 3.0, %v629_v4 }
  0xf9   : > { %782 = vrot.lane.b32.xlu1 %v692_v22, %s1216_s19 }
  0xfa   : > { %v725_v49 = vadd.f32 %v723_v46, %v713_v47  ;;  %v645_v9 = vmax.f32 %v637_v6, 0.0 }
  0xfb   : > { %v808_v10 = vpop.permute.xlu0 %807 }
  0xfc   : > { %834 = vperm.xlu0 %1140, %v830_v48   ;;  %v792_v60 = vpop.permute.xlu1 %791  ;;  %v653_v12 = vmin.f32 %v645_v9, 6.0  ;;  %v868_v9 = vld [vmem:[%s1468_s7] sm:$0xff] }
  0xfd   : > { %728 = vrot.lane.b32.xlu1 %v696_v41, %s1215_s18 }
  0xfe   : > { %v661_v17 = vmul.f32 %v653_v12, %v629_v4 }
  0xff   : > { %v824_v19 = vpop.permute.xlu0 %823 }
 0x100   : > { %848 = vperm.xlu0 %1140, %v844_v51   ;;  %v788_v63 = vpop.permute.xlu1 %787  ;;  %v669_v29 = vmul.f32 0.16666667, %v661_v17 }
 0x101   : > { %768 = vrot.lane.b32.xlu1 %v698_v52, %s1215_s18 }
 0x102   : > { %v699_v24 = vmul.f32 %v1381_v27, %v669_v29 }
 0x104   : > { %953 = vperm.xlu0 %1140, %v950_v53   ;;  %v804_v3 = vpop.permute.xlu1 %803  ;;  %v763_v34 = vmul.f32 %v760_v58, %v699_v24 }
 0x105   : > { %784 = vrot.lane.b32.xlu1 %v696_v41, %s1216_s19  ;;  %s967_s19 = scalar_lea.sflag [#allocation3], %s404_s30 }
 0x108   : > { %v840_v8 = vpop.permute.xlu1 %839 }
 0x109   : > { %816 = vrot.lane.b32.xlu1 %v696_v41, %s1217_s15 }
 0x10d   : > { %853 = vperm.xlu1 %1139, %v845_v54  }
 0x111   : > { %814 = vrot.lane.b32.xlu1 %v692_v22, %s1217_s15  ;;  %v820_v22 = vpop.permute.xlu0 %819  ;;  %s1057_s15 = sshll.u32 %s1306_s25, 7  ;;  %s1149_s25 = scalar_lea.vmem %s1148_s29, 256 }
 0x112   : > { %s978_s18 = scalar_lea.hbm %s1473_s12, %s1057_s15  ;;  %p1151_p1 = scmp.lt.s32.totalorder %s1149_s25, %s1143_s0 }
 0x114   : > { %p1152_p2 = por %p1151_p1, %p1150_p0 }
 0x115   : > { %946 = vperm.xlu1 %1139, %v943_v55  }
 0x116   : > { %p1153_p3 = pnand %p1152_p2, %p1146_p13 }
 0x163   : > { %v727_v11 = vpop.permute.xlu1 %726 }
 0x164   : > { %v738_v13 = vmul.f32 %v732_v56, %v727_v11 }
 0x165   : > { %v799_v35 = vpop.permute.xlu0 %798 }
 0x166   : > { %v740_v15 = vadd.f32 %v738_v13, %v724_v43  ;;  %v810_v53 = vmul.f32 %v804_v3, %v799_v35 }
 0x167   : > { %v767_v16 = vpop.permute.xlu1 %766 }
 0x168   : > { %v752_v28 = vadd.f32 %v750_v14, %v740_v15  ;;  %v778_v46 = vmul.f32 %v772_v7, %v767_v16 }
 0x16a   : > { %v764_v20 = vadd.f32 %v762_v18, %v752_v28  ;;  %v801_v40 = vpop.permute.xlu0 %800 }
 0x16b   : > { %v783_v21 = vpop.permute.xlu1 %782  ;;  %v811_v43 = vmul.f32 %v808_v10, %v801_v40 }
 0x16c   : > { %v780_v47 = vadd.f32 %v778_v46, %v764_v20  ;;  %v794_v48 = vmul.f32 %v788_v63, %v783_v21 }
 0x16e   : > { %v796_v51 = vadd.f32 %v794_v48, %v780_v47 }
 0x16f   : > { %v729_v23 = vpop.permute.xlu1 %728 }
 0x170   : > { %v739_v25 = vmul.f32 %v736_v61, %v729_v23  ;;  %v812_v58 = vadd.f32 %v810_v53, %v796_v51 }
 0x172   : > { %v741_v31 = vadd.f32 %v739_v25, %v725_v49 }
 0x173   : > { %v769_v32 = vpop.permute.xlu1 %768 }
 0x174   : > { %v753_v36 = vadd.f32 %v751_v30, %v741_v31  ;;  %v779_v38 = vmul.f32 %v776_v59, %v769_v32 }
 0x176   : > { %v765_v37 = vadd.f32 %v763_v34, %v753_v36 }
 0x177   : > { %v785_v39 = vpop.permute.xlu1 %784  ;;  %v835_v55 = vpop.permute.xlu0 %834 }
 0x178   : > { %v781_v33 = vadd.f32 %v779_v38, %v765_v37  ;;  %v795_v26 = vmul.f32 %v792_v60, %v785_v39 }
 0x17a   : > { %v797_v41 = vadd.f32 %v795_v26, %v781_v33 }
 0x17b   : > { %v817_v42 = vpop.permute.xlu1 %816  ;;  %v849_v2 = vpop.permute.xlu0 %848 }
 0x17c   : > { %v813_v44 = vadd.f32 %v811_v43, %v797_v41  ;;  %v827_v45 = vmul.f32 %v824_v19, %v817_v42 }
 0x17e   : > { %v829_v27 = vadd.f32 %v827_v45, %v813_v44 }
 0x17f   : > { %v954_v13 = vpop.permute.xlu0 %953 }
 0x180   : > { %v843_v49 = vmul.f32 %v840_v8, %v829_v27 }
 0x188   : > { %v854_v50 = vpop.permute.xlu1 %853 }
 0x189   : > { %v857_v52 = vadd.f32 %v854_v50, %v843_v49 }
 0x18b   : > { %v859_v54 = vadd.f32 3.0, %v857_v52 }
 0x18c   : > { %v815_v56 = vpop.permute.xlu1 %814 }
 0x18d   : > { %v861_v57 = vmax.f32 %v859_v54, 0.0  ;;  %v826_v59 = vmul.f32 %v820_v22, %v815_v56 }
 0x18f   : > { %v863_v60 = vmin.f32 %v861_v57, 6.0  ;;  %v828_v61 = vadd.f32 %v826_v59, %v812_v58 }
 0x190   : > { %v947_v10 = vpop.permute.xlu1 %946 }
 0x191   : > { %v865_v62 = vmul.f32 %v863_v60, %v857_v52  ;;  %v842_v1 = vmul.f32 %v835_v55, %v828_v61 }
 0x193   : > { %v867_v4 = vmul.f32 0.16666667, %v865_v62  ;;  %v856_v5 = vadd.f32 %v849_v2, %v842_v1 }
 0x195   : > { %v858_v63 = vadd.f32 3.0, %v856_v5  ;;  %1065 = vmatpush3.msra.mxu0 %v867_v4 }
 0x196   : > { %1066 = vmatprep.subr.mxu0 %v1205_v0  ;;  %v1055_v0 = vld [vmem:[%s1472_s11] ss:$0 sm:$0xff] }
 0x197   : > { %v860_v6 = vmax.f32 %v858_v63, 0.0 }
 0x199   : > { %v862_v3 = vmin.f32 %v860_v6, 6.0 }
 0x19b   : > { %v864_v7 = vmul.f32 %v862_v3, %v856_v5 }
 0x19d   : > { %v866_v8 = vmul.f32 0.16666667, %v864_v7 }
 0x19f   : > { %1067 = vmatpush3.msra.mxu0 %v866_v8 }
 0x1a0   : > { %1069 = vmatmul.mubr.msk.f32.vlgmr.msra.gmra.mxu0 %vm869_vm3, %v868_v9 }
 0x260   : > { %v939_v11 = vpop.f32.mrf.mxu0 }
 0x261   : > { %v949_v12 = vmul.f32 %v947_v10, %v939_v11 }
 0x262   : > { %v1070_v14 = vpop.f32.mrf.mxu0 }
 0x263   : > { %v956_v15 = vadd.f32 %v954_v13, %v949_v12 }
 0x265   : > { %v964_v16 = vmul.f32 %v1055_v0, %v956_v15 }
 0x267   : > { %965 = vst [vmem:[%s406_s16] sm:$0xff] %v964_v16 }
 0x268   : > { %1156 = shalt.err (!%p1153_p3)
}
 0x269   : > { %s1157_s20 = scalar_lea.hbm %s978_s18, 128  ;;  %s1161_s16 = scalar_lea.hbm %s1473_s12, 256 }
 0x26a   : > { %p1158_p4 = scmp.ne.s32.totalorder %s978_s18, %s1157_s20  ;;  %p1162_p9 = scmp.lt.s32.totalorder %s978_s18, %s1473_s12 }
 0x26b   : > { %p1163_p10 = scmp.lt.s32.totalorder %s1161_s16, %s1157_s20 }
 0x26c   : > { %p1159_p7 = pnand %p1158_p4, %p1323_p5 }
 0x26d   : > { %p1164_p11 = por %p1163_p10, %p1162_p9 }
 0x26e   : > { %p1160_p8 = pneg %p1159_p7 }
 0x270   : > { %p1165_p12 = pnand %p1164_p11, %p1160_p8 }
 0x272   : > { %1168 = shalt.err (!%p1165_p12)
}
 0x273   : > { %1071 = dma.vmem_to_hbm [thread:$0]  (%p1323_p5), %s981_s17, 128, %s978_s18, %s967_s19  }
 0x274 PF: > { %p1077_p13 = scmp.ge.s32.totalorder %s1203_s24, 2  ;;  %s992_s0 = sand.u32 1, %s1191_s21  }
 0x275   : > { %s993_s28 = scalar_lea.sflag [#allocation3], %s992_s0 }
 0x276   : > { %p1074_p0 = pnand %p1077_p13, %p1327_p6 }
 0x278   : > { %p1075_p1 = pneg %p1074_p0 }
 0x27a   : > { %1186 = dma.done.wait (%p1075_p1), %s993_s28, 128  }
 0x27b   : > { %1188 = vsyncadd (%p1075_p1), %s993_s28, 4294967168  ;;  %s1481_s29 = sld [smem:[#allocation5_spill]]  ;;  %p22_p2 = scmp.ge.s32.totalorder %s1310_s27, 4  }
 0x27c   : > { %s1482_s23 = sld [smem:[#allocation6_spill]]  ;;  %s1483_s21 = smov %s1195_s22 }
 0x27d   : > { %s1485_s24 = smov %s1310_s27  ;;  %24 = sbr.rel (!%p22_p2) target bundleno = 5 (0x5), region = 103 }
 0x281   : > { %s1484_s22 = smov %s1481_s29 }
 0x282   :  { %998 = vsyncpa [#allocation3], 1 }
 0x283   :  { %1000 = vsyncpa [#allocation3 + $0x1], 1 }

</bundles_post_ra>
